<compile_context>
chip_gen: v5e
topology: v5e:2x2
jax: 0.10.0
libtpu: 0.0.40
codegen_flags: <defaults>
</compile_context>

<pallas_src>
import jax
import jax.numpy as jnp
import numpy as np
from jax.experimental import pallas as pl
from jax.experimental.pallas import tpu as pltpu


def _um_loss_kernel(magnitude, batch_size, block_b, feat_dim):
    """Kernel factory. Static params are baked in as Python constants."""
    inv_d = 1.0 / float(feat_dim)

    def kernel(act_ref, bkg_ref, out_ref, acc_ref):
        c = pl.program_id(0)              # core-split axis ("parallel")
        b = pl.program_id(1)              # batch-block axis ("arbitrary")
        nb = pl.num_programs(1)

        @pl.when(b == 0)
        def _init():
            acc_ref[...] = jnp.zeros_like(acc_ref)

        # --- Reduce over feature dim D with f32 accumulation. -------------
        # No full-block f32 copies are materialized; 1/D is folded into the
        # norm below:  norm_T(mean_D(x)) == sqrt(sum_T(sum_D(x)^2)) / D.
        sum_act = jnp.sum(act_ref[...], axis=-1, dtype=jnp.float32)   # (Bt, T)
        sum_bkg = jnp.sum(bkg_ref[...], axis=-1, dtype=jnp.float32)   # (Bt, T)

        sq_act = jnp.sum(sum_act * sum_act, axis=-1, keepdims=True)   # (Bt, 1)
        sq_bkg = jnp.sum(sum_bkg * sum_bkg, axis=-1, keepdims=True)   # (Bt, 1)

        norm_act = jnp.sqrt(sq_act) * jnp.float32(inv_d)              # (Bt, 1)
        norm_bkg = jnp.sqrt(sq_bkg) * jnp.float32(inv_d)              # (Bt, 1)

        loss_act = jnp.maximum(jnp.float32(magnitude) - norm_act, 0.0)
        per_sample = (loss_act + norm_bkg) ** 2                       # (Bt, 1)

        # --- Mask samples past the end of the batch (partial / duplicated
        #     edge blocks).  jnp.where selects, so garbage in the padded
        #     region cannot leak through. -----------------------------------
        start = (c * nb + b) * block_b
        rows = jax.lax.broadcasted_iota(jnp.int32, per_sample.shape, 0) + start
        per_sample = jnp.where(rows < batch_size, per_sample, 0.0)

        acc_ref[...] += jnp.sum(per_sample, axis=0, keepdims=True)    # (1, 1)

        @pl.when(b == nb - 1)
        def _finalize():
            out_ref[...] = acc_ref[...]   # per-core un-normalized partial sum

    return kernel


def um_loss(feat_act, feat_bkg, magnitude, *, target_block_bytes=4 * 1024 * 1024):
    """Pallas implementation of UMLoss.forward. Returns a scalar."""
    assert feat_act.shape == feat_bkg.shape
    B, T, D = feat_act.shape

    # --- Pick the batch tile so that 2 inputs x 2 pipeline buffers of
    #     (Bt, T, D) fit comfortably in scoped VMEM on every generation. ----
    itemsize = jnp.dtype(feat_act.dtype).itemsize
    bytes_per_sample = T * D * itemsize
    block_b = int(max(1, min(B, target_block_bytes // max(1, bytes_per_sample))))

    num_blocks = (B + block_b - 1) // block_b
    # Outer "parallel" axis: lets v7x use both TensorCores; harmless (a
    # sequential loop) on single-TC chips.
    n_split = 2 if num_blocks >= 2 else 1
    nb_inner = (num_blocks + n_split - 1) // n_split

    def in_map(c, b):
        blk = c * nb_inner + b
        # Clamp so DMAs of (rare) overshoot blocks stay in-bounds; their
        # samples are masked to zero inside the kernel.
        blk = jnp.minimum(blk, num_blocks - 1)
        return (blk, 0, 0)

    partials = pl.pallas_call(
        _um_loss_kernel(float(magnitude), B, block_b, D),
        out_shape=jax.ShapeDtypeStruct((n_split, 1), jnp.float32),
        grid_spec=pltpu.PrefetchScalarGridSpec(
            num_scalar_prefetch=0,
            grid=(n_split, nb_inner),
            in_specs=[
                pl.BlockSpec((block_b, T, D), in_map),
                pl.BlockSpec((block_b, T, D), in_map),
            ],
            out_specs=pl.BlockSpec((1, 1), lambda c, b: (c, 0)),
            scratch_shapes=[pltpu.VMEM((1, 1), jnp.float32)],
        ),
        compiler_params=pltpu.CompilerParams(
            dimension_semantics=("parallel", "arbitrary"),
            vmem_limit_bytes=32 * 1024 * 1024,
        ),
    )(feat_act, feat_bkg)

    return jnp.sum(partials) / jnp.float32(B)


def um_loss_ref(feat_act, feat_bkg, magnitude):
    """Pure-JAX reference matching the PyTorch forward exactly."""
    feat_act = feat_act.astype(jnp.float32)
    feat_bkg = feat_bkg.astype(jnp.float32)
    loss_act = jax.nn.relu(
        magnitude - jnp.linalg.norm(jnp.mean(feat_act, axis=-1), axis=-1))
    loss_bkg = jnp.linalg.norm(jnp.mean(feat_bkg, axis=-1), axis=-1)
    return jnp.mean((loss_act + loss_bkg) ** 2)


if __name__ == "__main__":
    MAGNITUDE = 1.0

    # Small shapes implied by the forward: (batch, temporal, feature).
    B, T, D = 2, 8, 32
    key = jax.random.PRNGKey(0)
    k_act, k_bkg = jax.random.split(key)
    feat_act = jax.random.normal(k_act, (B, T, D), dtype=jnp.float32)
    feat_bkg = jax.random.normal(k_bkg, (B, T, D), dtype=jnp.float32)

    loss = um_loss(feat_act, feat_bkg, MAGNITUDE)
    jax.block_until_ready(loss)
    loss_ref = um_loss_ref(feat_act, feat_bkg, MAGNITUDE)
    np.testing.assert_allclose(np.asarray(loss), np.asarray(loss_ref),
                               rtol=1e-5, atol=1e-5)

    # Exercise the multi-block / two-partial / masked-edge path as well
    # (B not divisible by the batch tile) by forcing a tiny block budget.
    B2 = 7
    k_act2, k_bkg2 = jax.random.split(jax.random.PRNGKey(0), 2)
    feat_act2 = jax.random.normal(k_act2, (B2, T, D), dtype=jnp.float32)
    feat_bkg2 = jax.random.normal(k_bkg2, (B2, T, D), dtype=jnp.float32)
    loss2 = um_loss(feat_act2, feat_bkg2, MAGNITUDE,
                    target_block_bytes=2 * T * D * 4)  # -> block_b = 2
    jax.block_until_ready(loss2)
    loss2_ref = um_loss_ref(feat_act2, feat_bkg2, MAGNITUDE)
    np.testing.assert_allclose(np.asarray(loss2), np.asarray(loss2_ref),
                               rtol=1e-5, atol=1e-5)

    print("KERNEL_OK")
</pallas_src>

<mosaic_0001>
module attributes {stable_mosaic.version = 11 : i64} {
  func.func @kernel(%arg0: i32, %arg1: i32, %arg2: memref<2x8x32xf32, #tpu.memory_space<vmem>>, %arg3: memref<2x8x32xf32, #tpu.memory_space<vmem>>, %arg4: memref<1x1xf32, #tpu.memory_space<vmem>>, %arg5: memref<1x1xf32, #tpu.memory_space<vmem>>) attributes {dimension_semantics = [#tpu.dimension_semantics<parallel>, #tpu.dimension_semantics<arbitrary>], iteration_bounds = array<i64: 1, 1>, scalar_prefetch = 0 : i64, scratch_operands = 1 : i64, tpu.core_type = #tpu.core_type<tc>, window_params = [{transform_indices = @transform_0, window_bounds = array<i64: 2, 8, 32>}, {transform_indices = @transform_1, window_bounds = array<i64: 2, 8, 32>}, {transform_indices = @transform_2, window_bounds = array<i64: 1, 1>}]} {
    %c0_i32 = arith.constant 0 : i32
    %0 = arith.cmpi eq, %arg1, %c0_i32 : i32
    %1 = arith.extui %0 : i1 to i32
    %c0_i32_0 = arith.constant 0 : i32
    %2 = arith.cmpi ne, %1, %c0_i32_0 : i32
    scf.if %2 {
      %cst_22 = arith.constant 0.000000e+00 : f32
      %43 = vector.broadcast %cst_22 : f32 to vector<1x1xf32>
      %c0_23 = arith.constant 0 : index
      %c0_24 = arith.constant 0 : index
      %44 = vector.load %arg5[%c0_23, %c0_24] : memref<1x1xf32, #tpu.memory_space<vmem>>, vector<1x1xf32>
      tpu.vector_store %arg5[%c0_23, %c0_24], %43 {strides = array<i32>} : memref<1x1xf32, #tpu.memory_space<vmem>>, vector<1x1xf32>,
    } else {
    }
    %c0 = arith.constant 0 : index
    %c0_1 = arith.constant 0 : index
    %c0_2 = arith.constant 0 : index
    %3 = vector.load %arg2[%c0, %c0_1, %c0_2] : memref<2x8x32xf32, #tpu.memory_space<vmem>>, vector<2x8x32xf32>
    %cst = arith.constant dense<0.000000e+00> : vector<2x8xf32>
    %4 = vector.multi_reduction <add>, %3, %cst [2] : vector<2x8x32xf32> to vector<2x8xf32>
    %c0_3 = arith.constant 0 : index
    %c0_4 = arith.constant 0 : index
    %c0_5 = arith.constant 0 : index
    %5 = vector.load %arg3[%c0_3, %c0_4, %c0_5] : memref<2x8x32xf32, #tpu.memory_space<vmem>>, vector<2x8x32xf32>
    %cst_6 = arith.constant dense<0.000000e+00> : vector<2x8xf32>
    %6 = vector.multi_reduction <add>, %5, %cst_6 [2] : vector<2x8x32xf32> to vector<2x8xf32>
    %7 = arith.mulf %4, %4 : vector<2x8xf32>
    %cst_7 = arith.constant dense<0.000000e+00> : vector<2xf32>
    %8 = vector.multi_reduction <add>, %7, %cst_7 [1] : vector<2x8xf32> to vector<2xf32>
    %9 = vector.shape_cast %8 : vector<2xf32> to vector<2x1xf32>
    %10 = arith.mulf %6, %6 : vector<2x8xf32>
    %cst_8 = arith.constant dense<0.000000e+00> : vector<2xf32>
    %11 = vector.multi_reduction <add>, %10, %cst_8 [1] : vector<2x8xf32> to vector<2xf32>
    %12 = vector.shape_cast %11 : vector<2xf32> to vector<2x1xf32>
    %13 = math.sqrt %9 : vector<2x1xf32>
    %cst_9 = arith.constant 3.125000e-02 : f32
    %14 = vector.broadcast %cst_9 : f32 to vector<2x1xf32>
    %15 = arith.mulf %13, %14 : vector<2x1xf32>
    %16 = math.sqrt %12 : vector<2x1xf32>
    %cst_10 = arith.constant 3.125000e-02 : f32
    %17 = vector.broadcast %cst_10 : f32 to vector<2x1xf32>
    %18 = arith.mulf %16, %17 : vector<2x1xf32>
    %cst_11 = arith.constant 1.000000e+00 : f32
    %19 = vector.broadcast %cst_11 : f32 to vector<2x1xf32>
    %20 = arith.subf %19, %15 : vector<2x1xf32>
    %cst_12 = arith.constant 0.000000e+00 : f32
    %21 = vector.broadcast %cst_12 : f32 to vector<2x1xf32>
    %22 = arith.maximumf %20, %21 : vector<2x1xf32>
    %23 = arith.addf %22, %18 : vector<2x1xf32>
    %24 = arith.mulf %23, %23 : vector<2x1xf32>
    %c1_i32 = arith.constant 1 : i32
    %25 = arith.muli %arg0, %c1_i32 : i32
    %26 = arith.addi %25, %arg1 : i32
    %c2_i32 = arith.constant 2 : i32
    %27 = arith.muli %26, %c2_i32 : i32
    %28 = tpu.iota {dimensions = array<i32: 0>} : vector<2x1xi32>
    %29 = vector.broadcast %27 : i32 to vector<2x1xi32>
    %30 = arith.addi %28, %29 : vector<2x1xi32>
    %c2_i32_13 = arith.constant 2 : i32
    %31 = vector.broadcast %c2_i32_13 : i32 to vector<2x1xi32>
    %32 = arith.cmpi slt, %30, %31 : vector<2x1xi32>
    %cst_14 = arith.constant 0.000000e+00 : f32
    %33 = vector.broadcast %cst_14 : f32 to vector<2x1xf32>
    %34 = arith.select %32, %24, %33 : vector<2x1xi1>, vector<2x1xf32>
    %c0_15 = arith.constant 0 : index
    %c0_16 = arith.constant 0 : index
    %35 = vector.load %arg5[%c0_15, %c0_16] : memref<1x1xf32, #tpu.memory_space<vmem>>, vector<1x1xf32>
    %cst_17 = arith.constant dense<0.000000e+00> : vector<1xf32>
    %36 = vector.multi_reduction <add>, %34, %cst_17 [0] : vector<2x1xf32> to vector<1xf32>
    %37 = vector.shape_cast %36 : vector<1xf32> to vector<1x1xf32>
    %38 = arith.addf %35, %37 : vector<1x1xf32>
    %c0_18 = arith.constant 0 : index
    %c0_19 = arith.constant 0 : index
    %39 = vector.load %arg5[%c0_18, %c0_19] : memref<1x1xf32, #tpu.memory_space<vmem>>, vector<1x1xf32>
    tpu.vector_store %arg5[%c0_18, %c0_19], %38 {strides = array<i32>} : memref<1x1xf32, #tpu.memory_space<vmem>>, vector<1x1xf32>,
    %c0_i32_20 = arith.constant 0 : i32
    %40 = arith.cmpi eq, %arg1, %c0_i32_20 : i32
    %41 = arith.extui %40 : i1 to i32
    %c0_i32_21 = arith.constant 0 : i32
    %42 = arith.cmpi ne, %41, %c0_i32_21 : i32
    scf.if %42 {
      %c0_22 = arith.constant 0 : index
      %c0_23 = arith.constant 0 : index
      %43 = vector.load %arg5[%c0_22, %c0_23] : memref<1x1xf32, #tpu.memory_space<vmem>>, vector<1x1xf32>
      %c0_24 = arith.constant 0 : index
      %c0_25 = arith.constant 0 : index
      %44 = vector.load %arg4[%c0_24, %c0_25] : memref<1x1xf32, #tpu.memory_space<vmem>>, vector<1x1xf32>
      tpu.vector_store %arg4[%c0_24, %c0_25], %43 {strides = array<i32>} : memref<1x1xf32, #tpu.memory_space<vmem>>, vector<1x1xf32>,
    } else {
    }
    return
  }
  func.func @transform_0(%arg0: i32, %arg1: i32) -> (i32, i32, i32) {
    %c1_i32 = arith.constant 1 : i32
    %0 = arith.muli %arg0, %c1_i32 : i32
    %1 = arith.addi %0, %arg1 : i32
    %c0_i32 = arith.constant 0 : i32
    %2 = arith.minsi %1, %c0_i32 : i32
    %c0_i32_0 = arith.constant 0 : i32
    %c0_i32_1 = arith.constant 0 : i32
    %c0_i32_2 = arith.constant 0 : i32
    return %2, %c0_i32_0, %c0_i32_1 : i32, i32, i32
  }
  func.func @transform_1(%arg0: i32, %arg1: i32) -> (i32, i32, i32) {
    %c1_i32 = arith.constant 1 : i32
    %0 = arith.muli %arg0, %c1_i32 : i32
    %1 = arith.addi %0, %arg1 : i32
    %c0_i32 = arith.constant 0 : i32
    %2 = arith.minsi %1, %c0_i32 : i32
    %c0_i32_0 = arith.constant 0 : i32
    %c0_i32_1 = arith.constant 0 : i32
    %c0_i32_2 = arith.constant 0 : i32
    return %2, %c0_i32_0, %c0_i32_1 : i32, i32, i32
  }
  func.func @transform_2(%arg0: i32, %arg1: i32) -> (i32, i32) {
    %c0_i32 = arith.constant 0 : i32
    %c0_i32_0 = arith.constant 0 : i32
    return %arg0, %c0_i32 : i32, i32
  }
}

</mosaic_0001>

<bundles_post_ra>
// kernel: tpu_custom_call.1
= control target key start
LH: loop header
LB: loop body
LE: loop exit
PB: predicated region body
PF: predicated region fallthrough
CT: control target
= control target key end

     0   :  { %7 = vsyncpa [#allocation4], 0  ;;  %s311_s0 = inlined_call_operand.hbm [shape: f32[2,8,32], index: 0, kind: input, shape index: {}]   ;;  %s312_s1 = inlined_call_operand.hbm [shape: f32[2,8,32], index: 1, kind: input, shape index: {}]   ;;  %s313_s2 = inlined_call_operand.hbm [shape: f32[1,1], index: 2, kind: output, shape index: {}]  }
   0x1   :  { %8 = vsyncpa [#allocation7], 0 }
   0x2   :  { %9 = vsyncpa [#allocation5], 0  ;;  %s20_s11 = sshll.u32 %s311_s0, 4  ;;  %s278_s12 = smov [#allocation3]   ;;  %s21_s11 = int_to_ptr.hbm [resolvable:$true] %s20_s11 }
   0x3   :  { %s22_s13 = sshll.u32 %s278_s12, 4  ;;  %s39_s16 = sshll.u32 %s312_s1, 4  ;;  %s23_s13 = int_to_ptr.vmem [resolvable:$true] %s22_s13  ;;  %s40_s16 = int_to_ptr.hbm [resolvable:$true] %s39_s16 }
   0x4   :  { %s279_s17 = smov 128   ;;  %s280_s18 = smov 8  }
   0x5   :  { %28 = dma.hbm_to_vmem [thread:$0]  %s21_s11, 256, %s23_s13, [#allocation4], %s279_s17, %s279_s17, %s280_s18  }
   0x6   :  { %s281_s19 = smov [#allocation6]  }
   0x7   :  { %s41_s20 = sshll.u32 %s281_s19, 4  ;;  %s42_s20 = int_to_ptr.vmem [resolvable:$true] %s41_s20 }
   0x8   :  { %47 = dma.hbm_to_vmem [thread:$0]  %s40_s16, 256, %s42_s20, [#allocation7], %s279_s17, %s279_s17, %s280_s18  }
   0x9   :  { %272 = dma.done.wait [#allocation4], 256  }
   0xa   :  { %273 = vsyncadd [#allocation4], 4294967040 }
   0xb   :  { %274 = dma.done.wait [#allocation7], 256  }
   0xc   :  { %275 = vsyncadd [#allocation7], 4294967040  ;;  %vm72_vm0 = vcmask 261120   ;;  %v79_v0 = vld [vmem:[#allocation6] sm:$0xff]  ;;  %v70_v1 = vld [vmem:[#allocation3] sm:$0xff]  ;;  %v91_v10 = vlaneseq  ;;  %vm95_vm1 = vcmask 1041409  }
   0xd   :  { %v81_v2 = vsel %vm72_vm0, %v79_v0, 0.0  ;;  %v73_v3 = vsel %vm72_vm0, %v70_v1, 0.0  ;;  %v80_v4 = vld [vmem:[#allocation6 + $0x8] sm:$0xff]  ;;  %v71_v5 = vld [vmem:[#allocation3 + $0x8] sm:$0xff]  ;;  %vm98_vm2 = vcmask 58368   ;;  %vm68_vm3 = vcmask 0  }
   0xe   :  { %82 = vadd.xlane.f32.xlu1 %v81_v2  ;;  %74 = vadd.xlane.f32.xlu0 %v73_v3  ;;  %v84_v6 = vsel %vm72_vm0, %v80_v4, 0.0  ;;  %v76_v7 = vsel %vm72_vm0, %v71_v5, 0.0  ;;  %v92_v11 = vand.u32 127, %v91_v10  ;;  %v282_v31 = vmov 0.0   ;;  %s283_s0 = smov [#allocation8]   ;;  %s175_s23 = sshll.u32 %s313_s2, 4  ;;  %s176_s23 = int_to_ptr.hbm [resolvable:$true] %s175_s23 }
   0xf   :  { %69 = vst.msk [vmem:[#allocation2] sm:$0x1] %vm68_vm3, %v282_v31  ;;  %v146_v50 = vshrl.u32 %v91_v10, 7  ;;  %vm152_vm9 = vcmask 1041408   ;;  %s173_s1 = sshll.u32 %s283_s0, 4  ;;  %s174_s1 = int_to_ptr.vmem [resolvable:$true] %s173_s1 }
  0x11   :  { %vm149_vm8 = vcmp.lt.s32.totalorder %v146_v50, 2 }
  0x16   :  { %85 = vadd.xlane.f32.xlu1 %v84_v6  ;;  %77 = vadd.xlane.f32.xlu0 %v76_v7  ;;  %v151_v63 = vld [vmem:[#allocation2] sm:$0x1] }
  0x81   :  { %v83_v8 = vpop.xlane.xlu1 %82  ;;  %v75_v9 = vpop.xlane.xlu0 %74 }
  0x82   :  { %v87_v12 = vmul.f32 %v75_v9, %v75_v9  ;;  %v102_v16 = vmul.f32 %v83_v8, %v83_v8 }
  0x84   :  { %v93_v17 = vperm.slane %v87_v12, %v92_v11  ;;  %v106_v22 = vperm.slane %v102_v16, %v92_v11 }
  0x89   :  { %v86_v13 = vpop.xlane.xlu1 %85  ;;  %v78_v14 = vpop.xlane.xlu0 %77 }
  0x8a   :  { %v88_v15 = vmul.f32 %v78_v14, %v78_v14  ;;  %v103_v18 = vmul.f32 %v86_v13, %v86_v13 }
  0x8c   :  { %v94_v19 = vperm.slane %v88_v15, %v92_v11  ;;  %v107_v23 = vperm.slane %v103_v18, %v92_v11 }
  0x8e   :  { %v96_v20 = vsel %vm95_vm1, %v94_v19, %v93_v17  ;;  %v108_v24 = vsel %vm95_vm1, %v107_v23, %v106_v22 }
  0x8f   :  { %v99_v21 = vsel %vm98_vm2, %v96_v20, 0.0  ;;  %v110_v25 = vsel %vm98_vm2, %v108_v24, 0.0 }
  0x90   :  { %100 = vadd.xlane.f32.xlu2 %v99_v21 }
  0x98   :  { %111 = vadd.xlane.f32.xlu2 %v110_v25 }
 0x103   :  { %v101_v26 = vpop.xlane.xlu2 %100 }
 0x104   :  { %196 = vrsqrt.f32 %v101_v26  ;;  %vm120_vm4 = vcmp.eq.f32.partialorder %v101_v26, inf  ;;  %v123_v39 = vand.u32 2147483648, %v101_v26  ;;  %vm122_vm5 = vcmp.eq.f32.partialorder %v101_v26, 0.0 }
 0x10a   :  { %v197_v27 = vpop.eup %196 }
 0x10b   :  { %v114_v28 = vmul.f32 %v197_v27, %v101_v26  ;;  %v112_v29 = vpop.xlane.xlu2 %111 }
 0x10c   :  { %198 = vrsqrt.f32 %v112_v29  ;;  %vm133_vm6 = vcmp.eq.f32.partialorder %v112_v29, inf  ;;  %v136_v48 = vand.u32 2147483648, %v112_v29  ;;  %vm135_vm7 = vcmp.eq.f32.partialorder %v112_v29, 0.0 }
 0x10d   :  { %v115_v30 = vmul.f32 %v197_v27, %v114_v28 }
 0x10f   :  { %v116_v32 = vmul.f32 0.5, %v115_v30 }
 0x111   :  { %v117_v33 = vsub.f32 1.5, %v116_v32 }
 0x112   :  { %v199_v34 = vpop.eup %198 }
 0x113   :  { %v118_v35 = vmul.f32 %v197_v27, %v117_v33  ;;  %v127_v36 = vmul.f32 %v199_v34, %v112_v29 }
 0x115   :  { %v119_v37 = vmul.f32 %v118_v35, %v101_v26  ;;  %v128_v38 = vmul.f32 %v199_v34, %v127_v36 }
 0x117   :  { %v121_v40 = vsel %vm120_vm4, %v101_v26, %v119_v37  ;;  %v129_v41 = vmul.f32 0.5, %v128_v38 }
 0x118   :  { %v124_v42 = vsel %vm122_vm5, %v123_v39, %v121_v40 }
 0x119   :  { %v125_v43 = vmul.f32 0.03125, %v124_v42  ;;  %v130_v44 = vsub.f32 1.5, %v129_v41 }
 0x11b   :  { %v131_v45 = vmul.f32 %v199_v34, %v130_v44  ;;  %v139_v46 = vsub.f32 1.0, %v125_v43 }
 0x11d   :  { %v132_v47 = vmul.f32 %v131_v45, %v112_v29  ;;  %v140_v52 = vmax.f32 %v139_v46, 0.0 }
 0x11f   :  { %v134_v49 = vsel %vm133_vm6, %v112_v29, %v132_v47 }
 0x120   :  { %v137_v51 = vsel %vm135_vm7, %v136_v48, %v134_v49 }
 0x121   :  { %v138_v53 = vmul.f32 0.03125, %v137_v51 }
 0x123   :  { %v141_v54 = vadd.f32 %v140_v52, %v138_v53 }
 0x125   :  { %v142_v55 = vmul.f32 %v141_v54, %v141_v54 }
 0x127   :  { %v150_v56 = vsel %vm149_vm8, %v142_v55, 0.0 }
 0x128   :  { %v153_v57 = vsel %vm152_vm9, %v150_v56, 0.0 }
 0x129   :  { %v154_v58 = vrot.slane %v153_v57, 4 }
 0x12b   :  { %v155_v59 = vadd.f32 %v154_v58, %v153_v57 }
 0x12d   :  { %v156_v60 = vrot.slane %v155_v59, 2 }
 0x12f   :  { %v157_v61 = vadd.f32 %v156_v60, %v155_v59 }
 0x131   :  { %v158_v62 = vrot.slane %v157_v61, 1 }
 0x133   :  { %v159_v0 = vadd.f32 %v158_v62, %v157_v61 }
 0x135   :  { %v160_v1 = vadd.f32 %v159_v0, %v151_v63 }
 0x137   :  { %162 = vst.msk [vmem:[#allocation2] sm:$0x1] %vm68_vm3, %v160_v1 }
 0x13e   :  { %v166_v2 = vld [vmem:[#allocation2] sm:$0x1] }
 0x13f   :  { %167 = vst.msk [vmem:[#allocation8] sm:$0x1] %vm68_vm3, %v166_v2 }
 0x140   :  { %178 = dma.vmem_to_hbm [thread:$0]  %s174_s1, 16, %s176_s23, [#allocation5]  }
 0x141   :  { %276 = dma.done.wait [#allocation5], 16  }
 0x142   :  { %277 = vsyncadd [#allocation5], 4294967280 }
 0x143   :  { %183 = vsyncpa [#allocation4], 1 }
 0x144   :  { %184 = vsyncpa [#allocation7], 1 }
 0x145   :  { %185 = vsyncpa [#allocation5], 1 }

</bundles_post_ra>
